<compile_context>
chip_gen: v7x
topology: tpu7x:2x2x1
jax: 0.10.0
libtpu: 0.0.40
codegen_flags: <defaults>
</compile_context>

<pallas_src>
import functools

import jax
import jax.numpy as jnp
from jax.experimental import pallas as pl
from jax.experimental.pallas import tpu as pltpu

IN_FEATURES = 784
H1 = 128          # hidden1 width (already a full 128-lane vreg)
H2 = 64           # hidden2 width (padded to 128 lanes)
NUM_CLASSES = 10
LANE = 128
OUT_W = 16        # padded class width for the output store (f32 x 16 = 64 B/row)
NEG_BIG = -1e30   # folded softmax mask for padded class lanes


def mlp_kernel(x_ref, w1_ref, b1_ref, w2_ref, b2_ref, w3_ref, b3_ref, o_ref):
    # hidden1: cast the f32 x tile to bf16 in-kernel (avoids a separate XLA
    # cast pass over the whole array), (TB,784)@(784,128) -> f32, +b1, ReLU.
    x = x_ref[...].astype(jnp.bfloat16)
    h1 = jnp.dot(x, w1_ref[...], preferred_element_type=jnp.float32)
    h1 = jnp.maximum(h1 + b1_ref[...], 0.0)
    # drop_out1 (p=0.3): identity in inference mode.
    # hidden2 (out-lanes zero-padded to 128): (TB,128)@(128,128) -> f32, +b2, ReLU.
    h2 = jnp.dot(h1.astype(jnp.bfloat16), w2_ref[...],
                 preferred_element_type=jnp.float32)
    h2 = jnp.maximum(h2 + b2_ref[...], 0.0)
    # drop_out2 (p=0.3): identity in inference mode.
    # hidden3: (TB,128)@(128,16) -> f32, +b3.  Padded class lanes (>=10) carry
    # bias -1e30 (their w3 columns are zero), so they vanish in the softmax.
    logits = jnp.dot(h2.astype(jnp.bfloat16), w3_ref[...],
                     preferred_element_type=jnp.float32) + b3_ref[...]
    # Numerically stable softmax over the class dim.  Exact divide: the kernel
    # is DMA-bound, so the extra EUP/VPU work is free and rows sum to 1 to f32
    # precision.
    m = jnp.max(logits, axis=-1, keepdims=True)
    e = jnp.exp(logits - m)
    o_ref[...] = e / jnp.sum(e, axis=-1, keepdims=True)


@functools.partial(jax.jit, static_argnames=("tb",))
def perceptron_simple_mnist(x, params, *, tb=2048):
    """x: (B, 784) float32.  params: natural-shape f32 (w1,b1,w2,b2,w3,b3)."""
    w1, b1, w2, b2, w3, b3 = params
    B, D = x.shape

    # --- host-side weight prep (tiny, folded into the compile) ---
    w1p = w1.astype(jnp.bfloat16)                                       # (784,128)
    b1p = b1.reshape(1, H1).astype(jnp.float32)                         # (1,128)
    w2p = jnp.pad(w2, ((0, 0), (0, LANE - H2))).astype(jnp.bfloat16)    # (128,128)
    b2p = jnp.pad(b2.reshape(1, H2),
                  ((0, 0), (0, LANE - H2))).astype(jnp.float32)         # (1,128)
    # w3: zero-pad K 64->128 and N 10->16.
    w3p = jnp.pad(w3, ((0, LANE - H2),
                       (0, OUT_W - NUM_CLASSES))).astype(jnp.bfloat16)  # (128,16)
    # b3: padded class lanes get -1e30 so exp() underflows to 0 in the softmax.
    b3p = jnp.pad(b3.reshape(1, NUM_CLASSES),
                  ((0, 0), (0, OUT_W - NUM_CLASSES)),
                  constant_values=NEG_BIG).astype(jnp.float32)          # (1,16)

    # --- batch tiling: balanced tiles, >=2 tiles when the batch allows it
    # (the grid axis is "parallel" so v7x's two TensorCores split the tiles),
    # rounded to sublane groups so padding is at most 7 rows per tile. ---
    target_tiles = max(pl.cdiv(B, tb), 2 if B >= 16 else 1)
    tb_balanced = ((pl.cdiv(B, target_tiles) + 7) // 8) * 8
    TB = min(tb_balanced, ((B + 7) // 8) * 8)
    num_tiles = pl.cdiv(B, TB)
    Bp = num_tiles * TB
    x_p = x if Bp == B else jnp.pad(x, ((0, Bp - B), (0, 0)))   # stays f32

    flops = 2 * Bp * (D * H1 + LANE * LANE + LANE * OUT_W)
    bytes_accessed = (
        x_p.size * 4
        + (w1p.size + w2p.size + w3p.size) * 2
        + (b1p.size + b2p.size + b3p.size) * 4
        + Bp * OUT_W * 4
    )
    cost = pl.CostEstimate(flops=flops, transcendentals=Bp * OUT_W,
                           bytes_accessed=bytes_accessed)

    const = lambda i: (0, 0)  # weights/biases stay resident across grid steps
    out_padded = pl.pallas_call(
        mlp_kernel,
        out_shape=jax.ShapeDtypeStruct((Bp, OUT_W), jnp.float32),
        grid=(num_tiles,),
        in_specs=[
            pl.BlockSpec((TB, D), lambda i: (i, 0)),     # x tile (double-buffered)
            pl.BlockSpec((D, H1), const),                # w1
            pl.BlockSpec((1, H1), const),                # b1
            pl.BlockSpec((LANE, LANE), const),           # w2 (padded)
            pl.BlockSpec((1, LANE), const),              # b2 (padded)
            pl.BlockSpec((LANE, OUT_W), const),          # w3 (padded)
            pl.BlockSpec((1, OUT_W), const),             # b3 (padded, -1e30 mask)
        ],
        out_specs=pl.BlockSpec((TB, OUT_W), lambda i: (i, 0)),
        compiler_params=pltpu.CompilerParams(
            dimension_semantics=("parallel",),           # batch tiles independent
            vmem_limit_bytes=32 * 1024 * 1024,           # safe on v5e/v6e/v7x
        ),
        cost_estimate=cost,
    )(x_p, w1p, b1p, w2p, b2p, w3p, b3p)

    # Strip batch padding and padded class columns.
    return out_padded[:B, :NUM_CLASSES]


def init_params(key):
    # Deterministic init mimicking nn.Linear's U(-1/sqrt(fan_in), 1/sqrt(fan_in)).
    ks = jax.random.split(key, 6)

    def linear(kw, kb, fan_in, fan_out):
        bound = 1.0 / jnp.sqrt(float(fan_in))
        w = jax.random.uniform(kw, (fan_in, fan_out), jnp.float32, -bound, bound)
        b = jax.random.uniform(kb, (fan_out,), jnp.float32, -bound, bound)
        return w, b

    w1, b1 = linear(ks[0], ks[1], IN_FEATURES, H1)
    w2, b2 = linear(ks[2], ks[3], H1, H2)
    w3, b3 = linear(ks[4], ks[5], H2, NUM_CLASSES)
    return (w1, b1, w2, b2, w3, b3)


def reference_forward(x, params):
    w1, b1, w2, b2, w3, b3 = params
    h1 = jnp.maximum(x @ w1 + b1, 0.0)
    h2 = jnp.maximum(h1 @ w2 + b2, 0.0)
    logits = h2 @ w3 + b3
    return jax.nn.softmax(logits, axis=-1)


if __name__ == "__main__":
    key = jax.random.PRNGKey(0)
    kp, kx = jax.random.split(key)
    params = init_params(kp)
    # small batch of flattened 28x28 MNIST-like inputs
    x = jax.random.normal(kx, (8, IN_FEATURES), jnp.float32)

    out = perceptron_simple_mnist(x, params)
    out = jax.block_until_ready(out)

    assert out.shape == (8, NUM_CLASSES)
    # softmax rows sum to 1 (exact f32 divide in the kernel epilogue)
    assert jnp.allclose(jnp.sum(out, axis=-1), 1.0, atol=1e-3)
    # matches the f32 reference up to bf16 matmul precision
    ref = reference_forward(x, params)
    assert jnp.allclose(out, ref, atol=5e-2), float(jnp.max(jnp.abs(out - ref)))
    print("KERNEL_OK")
</pallas_src>

<mosaic_0001>
module attributes {stable_mosaic.version = 11 : i64} {
  func.func @mlp_kernel(%arg0: i32, %arg1: memref<8x784xf32, #tpu.memory_space<vmem>>, %arg2: memref<784x128xbf16, #tpu.memory_space<vmem>>, %arg3: memref<1x128xf32, #tpu.memory_space<vmem>>, %arg4: memref<128x128xbf16, #tpu.memory_space<vmem>>, %arg5: memref<1x128xf32, #tpu.memory_space<vmem>>, %arg6: memref<128x16xbf16, #tpu.memory_space<vmem>>, %arg7: memref<1x16xf32, #tpu.memory_space<vmem>>, %arg8: memref<8x16xf32, #tpu.memory_space<vmem>>) attributes {dimension_semantics = [#tpu.dimension_semantics<parallel>], iteration_bounds = array<i64: 1>, scalar_prefetch = 0 : i64, scratch_operands = 0 : i64, tpu.core_type = #tpu.core_type<tc>, window_params = [{transform_indices = @transform_0, window_bounds = array<i64: 8, 784>}, {pipeline_mode = #tpu.pipeline_mode<synchronous>, transform_indices = @transform_1, window_bounds = array<i64: 784, 128>}, {pipeline_mode = #tpu.pipeline_mode<synchronous>, transform_indices = @transform_2, window_bounds = array<i64: 1, 128>}, {pipeline_mode = #tpu.pipeline_mode<synchronous>, transform_indices = @transform_3, window_bounds = array<i64: 128, 128>}, {pipeline_mode = #tpu.pipeline_mode<synchronous>, transform_indices = @transform_4, window_bounds = array<i64: 1, 128>}, {pipeline_mode = #tpu.pipeline_mode<synchronous>, transform_indices = @transform_5, window_bounds = array<i64: 128, 16>}, {pipeline_mode = #tpu.pipeline_mode<synchronous>, transform_indices = @transform_6, window_bounds = array<i64: 1, 16>}, {transform_indices = @transform_7, window_bounds = array<i64: 8, 16>}]} {
    %c0 = arith.constant 0 : index
    %c0_0 = arith.constant 0 : index
    %0 = vector.load %arg1[%c0, %c0_0] : memref<8x784xf32, #tpu.memory_space<vmem>>, vector<8x784xf32>
    %1 = arith.truncf %0 : vector<8x784xf32> to vector<8x784xbf16>
    %c0_1 = arith.constant 0 : index
    %c0_2 = arith.constant 0 : index
    %2 = vector.load %arg2[%c0_1, %c0_2] : memref<784x128xbf16, #tpu.memory_space<vmem>>, vector<784x128xbf16>
    %cst = arith.constant dense<0.000000e+00> : vector<8x128xf32>
    %3 = tpu.matmul %1, %2, %cst {dimension_numbers = #tpu.dot_dimension_numbers<[1], [0], [0], [1], [0, 0, 1, 1], [], []>} : vector<8x784xbf16>, vector<784x128xbf16>, vector<8x128xf32> -> vector<8x128xf32>
    %c0_3 = arith.constant 0 : index
    %c0_4 = arith.constant 0 : index
    %4 = vector.load %arg3[%c0_3, %c0_4] : memref<1x128xf32, #tpu.memory_space<vmem>>, vector<1x128xf32>
    %5 = vector.broadcast %4 : vector<1x128xf32> to vector<8x128xf32>
    %6 = arith.addf %3, %5 : vector<8x128xf32>
    %cst_5 = arith.constant 0.000000e+00 : f32
    %7 = vector.broadcast %cst_5 : f32 to vector<8x128xf32>
    %8 = arith.maximumf %6, %7 : vector<8x128xf32>
    %9 = arith.truncf %8 : vector<8x128xf32> to vector<8x128xbf16>
    %c0_6 = arith.constant 0 : index
    %c0_7 = arith.constant 0 : index
    %10 = vector.load %arg4[%c0_6, %c0_7] : memref<128x128xbf16, #tpu.memory_space<vmem>>, vector<128x128xbf16>
    %cst_8 = arith.constant dense<0.000000e+00> : vector<8x128xf32>
    %11 = tpu.matmul %9, %10, %cst_8 {dimension_numbers = #tpu.dot_dimension_numbers<[1], [0], [0], [1], [0, 0, 1, 1], [], []>} : vector<8x128xbf16>, vector<128x128xbf16>, vector<8x128xf32> -> vector<8x128xf32>
    %c0_9 = arith.constant 0 : index
    %c0_10 = arith.constant 0 : index
    %12 = vector.load %arg5[%c0_9, %c0_10] : memref<1x128xf32, #tpu.memory_space<vmem>>, vector<1x128xf32>
    %13 = vector.broadcast %12 : vector<1x128xf32> to vector<8x128xf32>
    %14 = arith.addf %11, %13 : vector<8x128xf32>
    %cst_11 = arith.constant 0.000000e+00 : f32
    %15 = vector.broadcast %cst_11 : f32 to vector<8x128xf32>
    %16 = arith.maximumf %14, %15 : vector<8x128xf32>
    %17 = arith.truncf %16 : vector<8x128xf32> to vector<8x128xbf16>
    %c0_12 = arith.constant 0 : index
    %c0_13 = arith.constant 0 : index
    %18 = vector.load %arg6[%c0_12, %c0_13] : memref<128x16xbf16, #tpu.memory_space<vmem>>, vector<128x16xbf16>
    %cst_14 = arith.constant dense<0.000000e+00> : vector<8x16xf32>
    %19 = tpu.matmul %17, %18, %cst_14 {dimension_numbers = #tpu.dot_dimension_numbers<[1], [0], [0], [1], [0, 0, 1, 1], [], []>} : vector<8x128xbf16>, vector<128x16xbf16>, vector<8x16xf32> -> vector<8x16xf32>
    %c0_15 = arith.constant 0 : index
    %c0_16 = arith.constant 0 : index
    %20 = vector.load %arg7[%c0_15, %c0_16] : memref<1x16xf32, #tpu.memory_space<vmem>>, vector<1x16xf32>
    %21 = vector.broadcast %20 : vector<1x16xf32> to vector<8x16xf32>
    %22 = arith.addf %19, %21 : vector<8x16xf32>
    %cst_17 = arith.constant dense<0xFF800000> : vector<8xf32>
    %23 = vector.multi_reduction <maximumf>, %22, %cst_17 [1] : vector<8x16xf32> to vector<8xf32>
    %24 = vector.shape_cast %23 : vector<8xf32> to vector<8x1xf32>
    %25 = vector.broadcast %24 : vector<8x1xf32> to vector<8x16xf32>
    %26 = arith.subf %22, %25 : vector<8x16xf32>
    %27 = math.exp %26 : vector<8x16xf32>
    %cst_18 = arith.constant dense<0.000000e+00> : vector<8xf32>
    %28 = vector.multi_reduction <add>, %27, %cst_18 [1] : vector<8x16xf32> to vector<8xf32>
    %29 = vector.shape_cast %28 : vector<8xf32> to vector<8x1xf32>
    %30 = vector.broadcast %29 : vector<8x1xf32> to vector<8x16xf32>
    %31 = arith.divf %27, %30 : vector<8x16xf32>
    %c0_19 = arith.constant 0 : index
    %c0_20 = arith.constant 0 : index
    %32 = vector.load %arg8[%c0_19, %c0_20] : memref<8x16xf32, #tpu.memory_space<vmem>>, vector<8x16xf32>
    tpu.vector_store %arg8[%c0_19, %c0_20], %31 {strides = array<i32>} : memref<8x16xf32, #tpu.memory_space<vmem>>, vector<8x16xf32>,
    return
  }
  func.func @transform_0(%arg0: i32) -> (i32, i32) {
    %c0_i32 = arith.constant 0 : i32
    %c0_i32_0 = arith.constant 0 : i32
    return %arg0, %c0_i32 : i32, i32
  }
  func.func @transform_1(%arg0: i32) -> (i32, i32) {
    %c0_i32 = arith.constant 0 : i32
    %c0_i32_0 = arith.constant 0 : i32
    %c0_i32_1 = arith.constant 0 : i32
    return %c0_i32, %c0_i32_0 : i32, i32
  }
  func.func @transform_2(%arg0: i32) -> (i32, i32) {
    %c0_i32 = arith.constant 0 : i32
    %c0_i32_0 = arith.constant 0 : i32
    %c0_i32_1 = arith.constant 0 : i32
    return %c0_i32, %c0_i32_0 : i32, i32
  }
  func.func @transform_3(%arg0: i32) -> (i32, i32) {
    %c0_i32 = arith.constant 0 : i32
    %c0_i32_0 = arith.constant 0 : i32
    %c0_i32_1 = arith.constant 0 : i32
    return %c0_i32, %c0_i32_0 : i32, i32
  }
  func.func @transform_4(%arg0: i32) -> (i32, i32) {
    %c0_i32 = arith.constant 0 : i32
    %c0_i32_0 = arith.constant 0 : i32
    %c0_i32_1 = arith.constant 0 : i32
    return %c0_i32, %c0_i32_0 : i32, i32
  }
  func.func @transform_5(%arg0: i32) -> (i32, i32) {
    %c0_i32 = arith.constant 0 : i32
    %c0_i32_0 = arith.constant 0 : i32
    %c0_i32_1 = arith.constant 0 : i32
    return %c0_i32, %c0_i32_0 : i32, i32
  }
  func.func @transform_6(%arg0: i32) -> (i32, i32) {
    %c0_i32 = arith.constant 0 : i32
    %c0_i32_0 = arith.constant 0 : i32
    %c0_i32_1 = arith.constant 0 : i32
    return %c0_i32, %c0_i32_0 : i32, i32
  }
  func.func @transform_7(%arg0: i32) -> (i32, i32) {
    %c0_i32 = arith.constant 0 : i32
    %c0_i32_0 = arith.constant 0 : i32
    return %arg0, %c0_i32 : i32, i32
  }
}

</mosaic_0001>

<bundles_post_ra>
// kernel: perceptron_simple_mnist.1
= control target key start
LH: loop header
LB: loop body
LE: loop exit
PB: predicated region body
PF: predicated region fallthrough
CT: control target
= control target key end

     0   :  { %v1154_v44 = vmov 0.0   ;;  %vm1155_vm0 = vmmov 0   ;;  %vm441_vm1 = vcmask 130048   ;;  %s1461_s0 = inlined_call_operand.vmem [shape: f32[8,784], index: 0, kind: input, shape index: {}]   ;;  %s1462_s1 = inlined_call_operand.vmem [shape: bf16[784,128], index: 1, kind: input, shape index: {}]   ;;  %s1463_s2 = inlined_call_operand.vmem [shape: f32[1,128], index: 2, kind: input, shape index: {}]   ;;  %s1464_s3 = inlined_call_operand.vmem [shape: bf16[128,128], index: 3, kind: input, shape index: {}]   ;;  %s1465_s4 = inlined_call_operand.vmem [shape: f32[1,128], index: 4, kind: input, shape index: {}]   ;;  %s1466_s5 = inlined_call_operand.vmem [shape: bf16[128,16], index: 5, kind: input, shape index: {}]   ;;  %s1467_s6 = inlined_call_operand.vmem [shape: f32[1,16], index: 6, kind: input, shape index: {}]   ;;  %s1468_s7 = inlined_call_operand.hbm [shape: f32[8,16], index: 7, kind: output, shape index: {}]  }
   0x1   :  { %v1061_v0 = vld [vmem:[%s1462_s1 + $0x40] sm:$0xff]   ;;  %v1065_v4 = vld [vmem:[%s1462_s1 + $0x48] sm:$0xff]   ;;  %v1069_v8 = vld [vmem:[%s1462_s1 + $0x50] sm:$0xff]  }
   0x2   :  { %v1062_v1 = vld [vmem:[%s1462_s1] sm:$0xff]   ;;  %926 = vmatprep.subr.bf16.mxu0 %v1061_v0  ;;  %v1066_v5 = vld [vmem:[%s1462_s1 + $0x8] sm:$0xff]   ;;  %v1070_v9 = vld [vmem:[%s1462_s1 + $0x10] sm:$0xff]  }
   0x3   :  { %v1063_v2 = vld [vmem:[%s1462_s1 + $0xc0] sm:$0xff]   ;;  %927 = vmatpush3.bf16.msra.mxu0 %v1062_v1  ;;  %v1067_v6 = vld [vmem:[%s1462_s1 + $0xc8] sm:$0xff]   ;;  %v1071_v10 = vld [vmem:[%s1462_s1 + $0xd0] sm:$0xff]  }
   0x4   :  { %v1064_v3 = vld [vmem:[%s1462_s1 + $0x80] sm:$0xff]   ;;  %948 = vmatprep.subr.bf16.mxu1 %v1063_v2  ;;  %928 = vmatprep.subr.bf16.mxu0 %v1065_v4  ;;  %v1068_v7 = vld [vmem:[%s1462_s1 + $0x88] sm:$0xff]   ;;  %v1072_v11 = vld [vmem:[%s1462_s1 + $0x90] sm:$0xff]  }
   0x5   :  { %949 = vmatpush3.bf16.msra.mxu1 %v1064_v3  ;;  %v1073_v12 = vld [vmem:[%s1462_s1 + $0x58] sm:$0xff]   ;;  %v1077_v16 = vld [vmem:[%s1462_s1 + $0x60] sm:$0xff]   ;;  %v1081_v20 = vld [vmem:[%s1462_s1 + $0x68] sm:$0xff]  }
   0x6   :  { %950 = vmatprep.subr.bf16.mxu1 %v1067_v6  ;;  %v1074_v13 = vld [vmem:[%s1462_s1 + $0x18] sm:$0xff]   ;;  %v1078_v17 = vld [vmem:[%s1462_s1 + $0x20] sm:$0xff]   ;;  %v1082_v21 = vld [vmem:[%s1462_s1 + $0x28] sm:$0xff]  }
   0x7   :  { %929 = vmatpush3.bf16.msra.mxu0 %v1066_v5  ;;  %v1075_v14 = vld [vmem:[%s1462_s1 + $0xd8] sm:$0xff]   ;;  %v1079_v18 = vld [vmem:[%s1462_s1 + $0xe0] sm:$0xff]   ;;  %v1083_v22 = vld [vmem:[%s1462_s1 + $0xe8] sm:$0xff]  }
   0x8   :  { %930 = vmatprep.subr.bf16.mxu0 %v1069_v8  ;;  %v1076_v15 = vld [vmem:[%s1462_s1 + $0x98] sm:$0xff]   ;;  %v1080_v19 = vld [vmem:[%s1462_s1 + $0xa0] sm:$0xff]   ;;  %v1084_v23 = vld [vmem:[%s1462_s1 + $0xa8] sm:$0xff]  }
   0x9   :  { %951 = vmatpush3.bf16.msra.mxu1 %v1068_v7  ;;  %v1085_v24 = vld [vmem:[%s1462_s1 + $0x70] sm:$0xff]   ;;  %v1089_v28 = vld [vmem:[%s1462_s1 + $0x78] sm:$0xff]   ;;  %v29_v31 = vld [vmem:[%s1461_s0 + $0x8] sm:$0xff] }
   0xa   :  { %952 = vmatprep.subr.bf16.mxu1 %v1071_v10  ;;  %v1086_v25 = vld [vmem:[%s1462_s1 + $0x30] sm:$0xff]   ;;  %v1090_v29 = vld [vmem:[%s1462_s1 + $0x38] sm:$0xff]   ;;  %v36_v32 = vpack.c.bf16 %v29_v31, %v29_v31  ;;  %v28_v34 = vld [vmem:[%s1461_s0] sm:$0xff] }
   0xb   :  { %931 = vmatpush3.bf16.msra.mxu0 %v1070_v9  ;;  %v1087_v26 = vld [vmem:[%s1462_s1 + $0xf0] sm:$0xff]   ;;  %v1091_v30 = vld [vmem:[%s1462_s1 + $0xf8] sm:$0xff]   ;;  %v35_v35 = vpack.c.bf16 %v28_v34, %v28_v34  ;;  %v1093_v36 = vld [vmem:[%s1462_s1 + $0x140] sm:$0xff]  }
   0xc   :  { %932 = vmatprep.subr.bf16.mxu0 %v1073_v12  ;;  %v1088_v27 = vld [vmem:[%s1462_s1 + $0xb0] sm:$0xff]   ;;  %v1092_v33 = vld [vmem:[%s1462_s1 + $0xb8] sm:$0xff]   ;;  %477 = vmatprep.mubr.bf16.mxu0 %v36_v32  ;;  %v1094_v39 = vld [vmem:[%s1462_s1 + $0x100] sm:$0xff]  }
   0xd   :  { %953 = vmatpush3.bf16.msra.mxu1 %v1072_v11  ;;  %v31_v37 = vld [vmem:[%s1461_s0 + $0x18] sm:$0xff]  ;;  %v30_v40 = vld [vmem:[%s1461_s0 + $0x10] sm:$0xff]  ;;  %v1095_v42 = vld [vmem:[%s1462_s1 + $0x148] sm:$0xff]  }
   0xe   :  { %954 = vmatprep.subr.bf16.mxu1 %v1075_v14  ;;  %v38_v38 = vpack.c.bf16 %v31_v37, %v31_v37  ;;  %v37_v41 = vpack.c.bf16 %v30_v40, %v30_v40  ;;  %v1096_v43 = vld [vmem:[%s1462_s1 + $0x108] sm:$0xff]   ;;  %v1097_v45 = vld [vmem:[%s1462_s1 + $0x150] sm:$0xff]   ;;  %v1099_v47 = vld [vmem:[%s1462_s1 + $0x158] sm:$0xff]  }
   0xf   :  { %933 = vmatpush3.bf16.msra.mxu0 %v1074_v13  ;;  %v1098_v46 = vld [vmem:[%s1462_s1 + $0x110] sm:$0xff]   ;;  %v1100_v48 = vld [vmem:[%s1462_s1 + $0x118] sm:$0xff]   ;;  %v1101_v49 = vld [vmem:[%s1462_s1 + $0x160] sm:$0xff]  }
  0x10   :  { %934 = vmatprep.subr.bf16.mxu0 %v1077_v16  ;;  %517 = vmatprep.mubr.bf16.mxu1 %v38_v38  ;;  %v1102_v50 = vld [vmem:[%s1462_s1 + $0x120] sm:$0xff]   ;;  %v1103_v51 = vld [vmem:[%s1462_s1 + $0x168] sm:$0xff]   ;;  %v1105_v55 = vld [vmem:[%s1462_s1 + $0x170] sm:$0xff]  }
  0x11   :  { %955 = vmatpush3.bf16.msra.mxu1 %v1076_v15  ;;  %v1104_v52 = vld [vmem:[%s1462_s1 + $0x128] sm:$0xff]   ;;  %v1109_v53 = vld [vmem:[%s1462_s1 + $0x180] sm:$0xff]   ;;  %v34_v57 = vld [vmem:[%s1461_s0 + $0x30] sm:$0xff] }
  0x12   :  { %956 = vmatprep.subr.bf16.mxu1 %v1079_v18  ;;  %v33_v54 = vld [vmem:[%s1461_s0 + $0x28] sm:$0xff]  ;;  %v41_v58 = vpack.c.bf16 %v34_v57, %v34_v57  ;;  %v1106_v59 = vld [vmem:[%s1462_s1 + $0x130] sm:$0xff]   ;;  %v1107_v60 = vld [vmem:[%s1462_s1 + $0x178] sm:$0xff]  }
  0x13   :  { %935 = vmatpush3.bf16.msra.mxu0 %v1078_v17  ;;  %v40_v56 = vpack.c.bf16 %v33_v54, %v33_v54  ;;  %v1108_v61 = vld [vmem:[%s1462_s1 + $0x138] sm:$0xff]   ;;  %v32_v62 = vld [vmem:[%s1461_s0 + $0x20] sm:$0xff] }
  0x14   :  { %936 = vmatprep.subr.bf16.mxu0 %v1081_v20 }
  0x15   :  { %957 = vmatpush3.bf16.msra.mxu1 %v1080_v19 }
  0x16   :  { %958 = vmatprep.subr.bf16.mxu1 %v1083_v22 }
  0x17   :  { %937 = vmatpush3.bf16.msra.mxu0 %v1082_v21 }
  0x18   :  { %938 = vmatprep.subr.bf16.mxu0 %v1085_v24 }
  0x19   :  { %959 = vmatpush3.bf16.msra.mxu1 %v1084_v23 }
  0x1a   :  { %960 = vmatprep.subr.bf16.mxu1 %v1087_v26 }
  0x1b   :  { %939 = vmatpush3.bf16.msra.mxu0 %v1086_v25 }
  0x1c   :  { %940 = vmatprep.subr.bf16.mxu0 %v1089_v28 }
  0x1d   :  { %961 = vmatpush3.bf16.msra.mxu1 %v1088_v27 }
  0x1e   :  { %962 = vmatprep.subr.bf16.mxu1 %v1091_v30 }
  0x1f   :  { %941 = vmatpush3.bf16.msra.mxu0 %v1090_v29 }
  0x20   :  { %970 = vmatprep.subr.bf16.mxu0 %v1093_v36 }
  0x21   :  { %963 = vmatpush3.bf16.msra.mxu1 %v1092_v33 }
  0x22   :  { %478 = vmatmul.mubr.bf16.vlgmr.msra.gmra.mrb[0].mxu0 %v35_v35  ;;  %1012 = vmatprep.subr.bf16.mxu1 %v1154_v44 }
  0x23   :  { %971 = vmatpush3.bf16.msra.mxu0 %v1094_v39  ;;  %557 = vmatprep.mubr.bf16.mxu0 %v40_v56 }
  0x24   :  { %518 = vmatmul.mubr.bf16.vlgmr.msra.gmra.mrb[0].mxu1 %v37_v41  ;;  %972 = vmatprep.subr.bf16.mxu0 %v1095_v42 }
  0x25   :  { %1014 = vmatprep.mubr.msk.bf16.mxu1 %vm1155_vm0, %v1154_v44  ;;  %1013 = vmatpush3.bf16.msra.mxu1 %v1109_v53 }
  0x26   :  { %1018 = vmatprep.subr.bf16.mxu1 %v1154_v44 }
  0x27   :  { %973 = vmatpush3.bf16.msra.mxu0 %v1096_v43 }
  0x28   :  { %974 = vmatprep.subr.bf16.mxu0 %v1097_v45 }
  0x2b   :  { %975 = vmatpush3.bf16.msra.mxu0 %v1098_v46 }
  0x2c   :  { %976 = vmatprep.subr.bf16.mxu0 %v1099_v47  ;;  %1015 = vmatmul.mubr.msk.bf16.vlgmr.msra.gmra.mrb[4].mxu1 %vm441_vm1, %v41_v58 }
  0x2d   :  { %1034 = vmatprep.mubr.msk.bf16.mxu1 %vm1155_vm0, %v1154_v44 }
  0x2f   :  { %977 = vmatpush3.bf16.msra.mxu0 %v1100_v48 }
  0x30   :  { %978 = vmatprep.subr.bf16.mxu0 %v1101_v49 }
  0x33   :  { %979 = vmatpush3.bf16.msra.mxu0 %v1102_v50 }
  0x34   :  { %980 = vmatprep.subr.bf16.mxu0 %v1103_v51 }
  0x37   :  { %981 = vmatpush3.bf16.msra.mxu0 %v1104_v52 }
  0x38   :  { %982 = vmatprep.subr.bf16.mxu0 %v1105_v55 }
  0x3b   :  { %983 = vmatpush3.bf16.msra.mxu0 %v1106_v59 }
  0x3c   :  { %984 = vmatprep.subr.bf16.mxu0 %v1107_v60 }
  0x3d   :  { %12 = vsyncpa [#allocation3], 0  ;;  %v39_v63 = vpack.c.bf16 %v32_v62, %v32_v62  ;;  %v1110_v0 = vld [vmem:[%s1464_s3] sm:$0xff]   ;;  %v1111_v1 = vld [vmem:[%s1464_s3 + $0x8] sm:$0xff]  }
  0x3e   :  { %1019 = vmatpush3.bf16.msra.mxu1 %v1110_v0  ;;  %v1112_v2 = vld [vmem:[%s1464_s3 + $0x10] sm:$0xff]   ;;  %v1113_v3 = vld [vmem:[%s1464_s3 + $0x18] sm:$0xff]   ;;  %v1114_v4 = vld [vmem:[%s1464_s3 + $0x20] sm:$0xff]  }
  0x3f   :  { %985 = vmatpush3.bf16.msra.mxu0 %v1108_v61  ;;  %1020 = vmatprep.subr.bf16.mxu1 %v1154_v44  ;;  %v1115_v5 = vld [vmem:[%s1464_s3 + $0x28] sm:$0xff]   ;;  %v1116_v6 = vld [vmem:[%s1464_s3 + $0x30] sm:$0xff]   ;;  %v1117_v7 = vld [vmem:[%s1464_s3 + $0x38] sm:$0xff]  }
  0x40   :  { %1038 = vmatprep.subr.bf16.mxu0 %v1154_v44  ;;  %v1118_v8 = vld [vmem:[%s1466_s5] sm:$0xff]   ;;  %v1119_v9 = vld [vmem:[%s1466_s5 + $0x8] sm:$0xff]   ;;  %v1120_v10 = vld [vmem:[%s1466_s5 + $0x10] sm:$0xff]  }
  0x41   :  { %v1121_v11 = vld [vmem:[%s1466_s5 + $0x18] sm:$0xff]   ;;  %v1122_v12 = vld [vmem:[%s1466_s5 + $0x20] sm:$0xff]   ;;  %v1123_v13 = vld [vmem:[%s1466_s5 + $0x28] sm:$0xff]  }
  0x42   :  { %558 = vmatmul.mubr.bf16.vlgmr.msra.gmra.mrb[4].mxu0 %v39_v63  ;;  %1021 = vmatpush3.bf16.msra.mxu1 %v1111_v1  ;;  %v857_v15 = vld [vmem:[%s1463_s2] ss:$0 sm:$0xff]  ;;  %v1124_v40 = vld [vmem:[%s1466_s5 + $0x30] sm:$0xff]   ;;  %v1125_v41 = vld [vmem:[%s1466_s5 + $0x38] sm:$0xff]  }
  0x43   :  { %1054 = vmatprep.mubr.msk.bf16.mxu0 %vm1155_vm0, %v1154_v44  ;;  %1022 = vmatprep.subr.bf16.mxu1 %v1154_v44  ;;  %v908_v42 = vld [vmem:[%s1465_s4] ss:$0 sm:$0xff]  ;;  %s1156_s4 = smov [#allocation2]  }
  0x44   :  { %1039 = vmatpush3.bf16.msra.mxu0 %v1118_v8  ;;  %s849_s5 = sshll.u32 %s1156_s4, 4  ;;  %s850_s5 = int_to_ptr.vmem [resolvable:$true] %s849_s5 }
  0x45   :  { %1040 = vmatprep.subr.bf16.mxu0 %v1154_v44  ;;  %p1135_p1 = scmp.lt.s32.totalorder %s850_s5, %s850_s5 }
  0x46   :  { %1023 = vmatpush3.bf16.msra.mxu1 %v1112_v2 }
  0x47   :  { %1024 = vmatprep.subr.bf16.mxu1 %v1154_v44 }
  0x48   :  { %1041 = vmatpush3.bf16.msra.mxu0 %v1119_v9 }
  0x49   :  { %1042 = vmatprep.subr.bf16.mxu0 %v1154_v44 }
  0x4a   :  { %1025 = vmatpush3.bf16.msra.mxu1 %v1113_v3 }
  0x4b   :  { %1026 = vmatprep.subr.bf16.mxu1 %v1154_v44 }
  0x4c   :  { %1043 = vmatpush3.bf16.msra.mxu0 %v1120_v10 }
  0x4d   :  { %1044 = vmatprep.subr.bf16.mxu0 %v1154_v44 }
  0x4e   :  { %1027 = vmatpush3.bf16.msra.mxu1 %v1114_v4 }
  0x4f   :  { %1028 = vmatprep.subr.bf16.mxu1 %v1154_v44 }
  0x50   :  { %1045 = vmatpush3.bf16.msra.mxu0 %v1121_v11 }
  0x51   :  { %1046 = vmatprep.subr.bf16.mxu0 %v1154_v44 }
  0x52   :  { %1029 = vmatpush3.bf16.msra.mxu1 %v1115_v5 }
  0x53   :  { %1030 = vmatprep.subr.bf16.mxu1 %v1154_v44 }
  0x54   :  { %1047 = vmatpush3.bf16.msra.mxu0 %v1122_v12 }
  0x55   :  { %1048 = vmatprep.subr.bf16.mxu0 %v1154_v44 }
  0x56   :  { %1031 = vmatpush3.bf16.msra.mxu1 %v1116_v6 }
  0x57   :  { %1032 = vmatprep.subr.bf16.mxu1 %v1154_v44 }
  0x58   :  { %1049 = vmatpush3.bf16.msra.mxu0 %v1123_v13 }
  0x59   :  { %1050 = vmatprep.subr.bf16.mxu0 %v1154_v44 }
  0x5a   :  { %1033 = vmatpush3.bf16.msra.mxu1 %v1117_v7 }
  0x5c   :  { %1051 = vmatpush3.bf16.msra.mxu0 %v1124_v40 }
  0x5d   :  { %1052 = vmatprep.subr.bf16.mxu0 %v1154_v44  ;;  %v917_v44 = vld [vmem:[%s1467_s6] ss:$0 sm:$0xff]  ;;  %s1130_s6 = scalar_lea.vmem %s850_s5, 128 }
  0x5e   :  { %p1131_p0 = scmp.ne.s32.totalorder %s850_s5, %s1130_s6  ;;  %p1136_p2 = scmp.lt.s32.totalorder %s1130_s6, %s1130_s6 }
  0x60   :  { %1053 = vmatpush3.bf16.msra.mxu0 %v1125_v41  ;;  %p1137_p3 = por %p1136_p2, %p1135_p1 }
  0x62   :  { %p1138_p4 = pnand %p1137_p3, %p1131_p0 }
  0xf5   :  { %v942_v14 = vpop.f32.mrb[0].mxu0 }
  0xf6   :  { %v943_v16 = vpop.f32.mrb[1].mxu0 }
  0xf7   :  { %v944_v17 = vadd.f32 %v943_v16, %v942_v14  ;;  %v945_v18 = vpop.f32.mrb[2].mxu0  ;;  %v964_v19 = vpop.f32.mrb[0].mxu1 }
  0xf8   :  { %v946_v20 = vpop.f32.mrb[3].mxu0  ;;  %v965_v22 = vpop.f32.mrb[1].mxu1 }
  0xf9   :  { %v480_v21 = vadd.f32 %v944_v17, %v857_v15  ;;  %v966_v23 = vadd.f32 %v965_v22, %v964_v19  ;;  %v967_v24 = vpop.f32.mrb[2].mxu1 }
  0xfa   :  { %v968_v25 = vpop.f32.mrb[3].mxu1 }
  0xfb   :  { %v520_v26 = vadd.f32 %v966_v23, %v480_v21 }
  0xff   :  { %v599_v27 = vpop.f32.mrb[4].mxu1 }
 0x100   :  { %v1016_v28 = vpop.f32.mrb[5].mxu1 }
 0x101   :  { %v602_v29 = vpop.f32.mrb[6].mxu1 }
 0x102   :  { %v1017_v30 = vpop.f32.mrb[7].mxu1 }
 0x115   :  { %v986_v31 = vpop.f32.mrb[4].mxu0 }
 0x116   :  { %v987_v32 = vpop.f32.mrb[5].mxu0 }
 0x117   :  { %v988_v33 = vadd.f32 %v987_v32, %v986_v31  ;;  %v989_v34 = vpop.f32.mrb[6].mxu0 }
 0x118   :  { %v990_v35 = vpop.f32.mrb[7].mxu0 }
 0x119   :  { %v560_v36 = vadd.f32 %v988_v33, %v520_v26 }
 0x11b   :  { %v600_v37 = vadd.f32 %v599_v27, %v560_v36 }
 0x11d   :  { %v605_v38 = vmax.f32 %v600_v37, 0.0 }
 0x11f   :  { %v606_v39 = vpack.c.bf16 %v605_v38, %v605_v38 }
 0x121   :  { %1035 = vmatmul.mubr.bf16.vlgmr.msra.gmra.mrb[8].mxu1 %v606_v39 }
 0x1f4   :  { %v712_v43 = vpop.f32.mrb[8].mxu1 }
 0x1f5   :  { %v713_v45 = vadd.f32 %v908_v42, %v712_v43  ;;  %v1036_v46 = vpop.f32.mrb[9].mxu1 }
 0x1f6   :  { %v715_v47 = vpop.f32.mrb[10].mxu1 }
 0x1f7   :  { %v718_v48 = vmax.f32 %v713_v45, 0.0  ;;  %v1037_v49 = vpop.f32.mrb[11].mxu1 }
 0x1f9   :  { %v719_v50 = vpack.c.bf16 %v718_v48, %v718_v48 }
 0x1fb   :  { %1055 = vmatmul.mubr.bf16.vlgmr.msra.gmra.mrb[8].mxu0 %v719_v50 }
 0x2ce   :  { %v825_v51 = vpop.f32.mrb[8].mxu0 }
 0x2cf   :  { %v826_v52 = vadd.f32 %v917_v44, %v825_v51  ;;  %v1056_v53 = vpop.f32.mrb[9].mxu0 }
 0x2d0   :  { %v828_v54 = vpop.f32.mrb[10].mxu0 }
 0x2d1   :  { %v1057_v55 = vpop.f32.mrb[11].mxu0  ;;  %v831_v56 = vsel %vm441_vm1, %v826_v52, -inf }
 0x2d2   :  { %832 = vmax.xlane.f32.xlu0 %v831_v56 }
 0x35f   :  { %v833_v57 = vpop.xlane.xlu0 %832 }
 0x360   :  { %v834_v58 = vsub.f32 %v826_v52, %v833_v57 }
 0x362   :  { %v835_v59 = vmul.f32 1.442695, %v834_v58 }
 0x364   :  { %1126 = vpow2.f32 %v835_v59 }
 0x36e   :  { %v1127_v60 = vpop.eup %1126 }
 0x36f   :  { %v837_v61 = vsel %vm441_vm1, %v1127_v60, 0.0 }
 0x370   :  { %838 = vadd.xlane.f32.xlu0 %v837_v61 }
 0x3fd   :  { %v839_v62 = vpop.xlane.xlu0 %838 }
 0x3fe   :  { %1128 = vrcp.f32 %v839_v62 }
 0x408   :  { %v1129_v63 = vpop.eup %1128 }
 0x409   :  { %v841_v0 = vmul.f32 %v1129_v63, %v1127_v60 }
 0x40b   :  { %842 = vst.msk [vmem:[#allocation2] sm:$0xff] %vm441_vm1, %v841_v0 }
 0x40c   :  { %1141 = shalt.err (!%p1138_p4)
}
 0x40d   :  { %s1142_s9 = scalar_lea.hbm %s1468_s7, 128 }
 0x40e   :  { %p1143_p5 = scmp.ne.s32.totalorder %s1468_s7, %s1142_s9  ;;  %p1146_p6 = scmp.lt.u32.totalorder %s1142_s9, %s1468_s7 }
 0x410   :  { %p1148_p7 = pnand %p1146_p6, %p1143_p5 }
 0x412   :  { %1151 = shalt.err (!%p1148_p7)
}
 0x413   :  { %852 = dma.vmem_to_hbm [thread:$0]  %s850_s5, 128, %s1468_s7, [#allocation3]  }
 0x414   :  { %1152 = dma.done.wait [#allocation3], 128  }
 0x415   :  { %1153 = vsyncadd [#allocation3], 4294967168 }
 0x416   :  { %856 = vsyncpa [#allocation3], 1 }

</bundles_post_ra>
